<compile_context>
chip_gen: v5e
topology: v5e:2x2
jax: 0.10.0
libtpu: 0.0.40
codegen_flags: <defaults>
</compile_context>

<pallas_src>
import jax
import jax.numpy as jnp
from jax.experimental import pallas as pl
from jax.experimental.pallas import tpu as pltpu


def _round_up(v, m):
    return ((v + m - 1) // m) * m


def mlp_kernel(x_ref, w1_ref, b1_ref, w2_ref, b2_ref, o_ref):
    # hidden = x @ W1 + b1 ; W1 already (F, H) -> canonical (M,K)@(K,N), MXU
    # accumulates in f32 regardless of operand dtype.
    h = jnp.dot(x_ref[...], w1_ref[...], preferred_element_type=jnp.float32)
    h = jax.nn.sigmoid(h + b1_ref[...])      # f32 bias add, logistic on the EUP
    # out = sigmoid(h) @ W2 + b2 ; cast the activation to the MXU operand
    # dtype (bf16 on v6e/v7x, no-op for f32), keep the accumulate + bias in f32.
    out = jnp.dot(h.astype(w2_ref.dtype), w2_ref[...],
                  preferred_element_type=jnp.float32)
    o_ref[...] = (out + b2_ref[...]).astype(o_ref.dtype)


def prepare_params(w1, b1, w2, b2, *, compute_dtype=jnp.bfloat16):
    """One-time parameter preparation (hoisted out of the per-call hot path).

    Inputs use the PyTorch nn.Linear layout:
      w1: (H, F), b1: (H,), w2: (O, H), b2: (O,)
    Returns pre-transposed / pre-padded tensors:
      w1t: (F, H)      in compute_dtype
      b1 : (1, H)      f32
      w2t: (H, O_pad)  in compute_dtype, O padded to a multiple of 128 with
                       zero rows so the kernel's output stores are lane-dense
      b2 : (1, O_pad)  f32 (zero-padded)
    """
    H, F = w1.shape
    O = w2.shape[0]
    O_pad = _round_up(O, 128)
    w2p = jnp.pad(w2, ((0, O_pad - O), (0, 0))) if O_pad != O else w2
    b2p = jnp.pad(b2, (0, O_pad - O)) if O_pad != O else b2
    return dict(
        w1t=jnp.asarray(w1.T, dtype=compute_dtype),
        b1=jnp.asarray(b1, jnp.float32).reshape(1, H),
        w2t=jnp.asarray(w2p.T, dtype=compute_dtype),
        b2=jnp.asarray(b2p, jnp.float32).reshape(1, O_pad),
        n_output=O,
        compute_dtype=jnp.dtype(compute_dtype),
    )


def network_forward(x, params, *, tb=1024):
    """Pallas equivalent of Network.forward on prepared params.

    x: (B, n_feature) float32 (cast to params['compute_dtype'] for the MXU).
    """
    w1t, b1 = params["w1t"], params["b1"]
    w2t, b2 = params["w2t"], params["b2"]
    O = params["n_output"]
    cdt = params["compute_dtype"]

    B, F = x.shape
    H = w1t.shape[1]
    O_pad = w2t.shape[1]

    # ---- batch tile selection -------------------------------------------
    # Sublane-aligned; cap so the grid has >=2 steps when B allows (v7x
    # megacore sharding of the "parallel" axis); pad B so tb divides it.
    B8 = _round_up(B, 8)
    if B8 <= 8:
        tb_eff = B8
    else:
        tb_eff = min(max(8, (tb // 8) * 8), _round_up((B8 + 1) // 2, 8))
    B_pad = _round_up(B8, tb_eff)

    # ---- VMEM budgeting ---------------------------------------------------
    in_dsize = jnp.dtype(cdt).itemsize
    w_bytes = (H * F + H * O_pad) * in_dsize + (H + O_pad) * 4
    io_bytes = 2 * tb_eff * (F * in_dsize + O_pad * 4)   # double-buffered x/out
    # TODO(synk): if w_bytes alone approaches ~32 MiB (half of v7x's 64 MiB
    # VMEM), switch to a hidden-dim-tiled grid (extra grid axis over H with an
    # f32 VMEM accumulator + pl.when init/finalize) instead of keeping whole
    # weights resident.
    VMEM_BUDGET = 48 * 1024 * 1024                        # fits v7x's 64 MiB
    while io_bytes > max(VMEM_BUDGET - w_bytes, 0) and tb_eff > 8:
        tb_eff = max(8, (tb_eff // 2) // 8 * 8)
        io_bytes = 2 * tb_eff * (F * in_dsize + O_pad * 4)
        B_pad = _round_up(B8, tb_eff)
    vmem_limit = int(min(max((w_bytes + io_bytes) * 1.25, 4 * 1024 * 1024),
                         64 * 1024 * 1024))

    # ---- per-call input prep (cheap: only x) ------------------------------
    x_in = x if x.dtype == cdt else x.astype(cdt)
    if B_pad != B:
        x_in = jnp.pad(x_in, ((0, B_pad - B), (0, 0)))

    grid = (B_pad // tb_eff,)

    cost = pl.CostEstimate(
        flops=2 * B_pad * (F * H + H * O_pad),
        transcendentals=B_pad * H,
        bytes_accessed=(B_pad * F * in_dsize
                        + (H * F + H * O_pad) * in_dsize
                        + (H + O_pad) * 4
                        + B_pad * O_pad * 4),
    )

    out_padded = pl.pallas_call(
        mlp_kernel,
        out_shape=jax.ShapeDtypeStruct((B_pad, O_pad), jnp.float32),
        grid_spec=pltpu.PrefetchScalarGridSpec(
            num_scalar_prefetch=0,
            grid=grid,
            in_specs=[
                # x tiled along batch -> DMA of tile i+1 overlaps compute of i.
                pl.BlockSpec((tb_eff, F), lambda i: (i, 0)),
                # Weights / biases: constant index_map -> VMEM-resident.
                pl.BlockSpec((F, H), lambda i: (0, 0)),
                pl.BlockSpec((1, H), lambda i: (0, 0)),
                pl.BlockSpec((H, O_pad), lambda i: (0, 0)),
                pl.BlockSpec((1, O_pad), lambda i: (0, 0)),
            ],
            out_specs=pl.BlockSpec((tb_eff, O_pad), lambda i: (i, 0)),
        ),
        compiler_params=pltpu.CompilerParams(
            dimension_semantics=("parallel",),
            vmem_limit_bytes=vmem_limit),
        cost_estimate=cost,
    )(x_in, w1t, b1, w2t, b2)

    if B_pad != B or O_pad != O:
        return out_padded[:B, :O]
    return out_padded


def reference_forward(x, w1, b1, w2, b2):
    h = jax.nn.sigmoid(x @ w1.T + b1)
    return h @ w2.T + b2


if __name__ == "__main__":
    # Small shapes consistent with the module; B=16 yields a 2-step grid.
    B, n_feature, n_hidden, n_output = 16, 16, 32, 4

    key = jax.random.PRNGKey(0)
    kx, kw1, kb1, kw2, kb2 = jax.random.split(key, 5)

    x = jax.random.normal(kx, (B, n_feature), dtype=jnp.float32)

    # Deterministic PyTorch-style init: U(-1/sqrt(fan_in), 1/sqrt(fan_in))
    bound1 = 1.0 / jnp.sqrt(n_feature)
    bound2 = 1.0 / jnp.sqrt(n_hidden)
    w1 = jax.random.uniform(kw1, (n_hidden, n_feature), jnp.float32, -bound1, bound1)
    b1 = jax.random.uniform(kb1, (n_hidden,), jnp.float32, -bound1, bound1)
    w2 = jax.random.uniform(kw2, (n_output, n_hidden), jnp.float32, -bound2, bound2)
    b2 = jax.random.uniform(kb2, (n_output,), jnp.float32, -bound2, bound2)

    ref = reference_forward(x, w1, b1, w2, b2)

    # f32 path: exact parity with the reference.
    params_f32 = prepare_params(w1, b1, w2, b2, compute_dtype=jnp.float32)
    out_f32 = jax.block_until_ready(network_forward(x, params_f32, tb=8))
    assert out_f32.shape == (B, n_output)
    assert jnp.allclose(out_f32, ref, atol=1e-5, rtol=1e-5), "f32 mismatch vs reference"

    # bf16-operand path (recommended on v6e/v7x): f32 accumulate, looser tol.
    params_bf16 = prepare_params(w1, b1, w2, b2, compute_dtype=jnp.bfloat16)
    out_bf16 = jax.block_until_ready(network_forward(x, params_bf16))
    assert out_bf16.shape == (B, n_output)
    assert jnp.allclose(out_bf16, ref, atol=5e-2, rtol=5e-2), "bf16 mismatch vs reference"

    print("KERNEL_OK")
</pallas_src>

<mosaic_0001>
module attributes {stable_mosaic.version = 11 : i64} {
  func.func @mlp_kernel(%arg0: i32, %arg1: memref<8x16xf32, #tpu.memory_space<vmem>>, %arg2: memref<16x32xf32, #tpu.memory_space<vmem>>, %arg3: memref<1x32xf32, #tpu.memory_space<vmem>>, %arg4: memref<32x128xf32, #tpu.memory_space<vmem>>, %arg5: memref<1x128xf32, #tpu.memory_space<vmem>>, %arg6: memref<8x128xf32, #tpu.memory_space<vmem>>) attributes {dimension_semantics = [#tpu.dimension_semantics<parallel>], iteration_bounds = array<i64: 2>, scalar_prefetch = 0 : i64, scratch_operands = 0 : i64, tpu.core_type = #tpu.core_type<tc>, window_params = [{transform_indices = @transform_0, window_bounds = array<i64: 8, 16>}, {pipeline_mode = #tpu.pipeline_mode<synchronous>, transform_indices = @transform_1, window_bounds = array<i64: 16, 32>}, {pipeline_mode = #tpu.pipeline_mode<synchronous>, transform_indices = @transform_2, window_bounds = array<i64: 1, 32>}, {pipeline_mode = #tpu.pipeline_mode<synchronous>, transform_indices = @transform_3, window_bounds = array<i64: 32, 128>}, {pipeline_mode = #tpu.pipeline_mode<synchronous>, transform_indices = @transform_4, window_bounds = array<i64: 1, 128>}, {transform_indices = @transform_5, window_bounds = array<i64: 8, 128>}]} {
    %c0 = arith.constant 0 : index
    %c0_0 = arith.constant 0 : index
    %0 = vector.load %arg1[%c0, %c0_0] : memref<8x16xf32, #tpu.memory_space<vmem>>, vector<8x16xf32>
    %c0_1 = arith.constant 0 : index
    %c0_2 = arith.constant 0 : index
    %1 = vector.load %arg2[%c0_1, %c0_2] : memref<16x32xf32, #tpu.memory_space<vmem>>, vector<16x32xf32>
    %cst = arith.constant dense<0.000000e+00> : vector<8x32xf32>
    %2 = tpu.matmul %0, %1, %cst {dimension_numbers = #tpu.dot_dimension_numbers<[1], [0], [0], [1], [0, 0, 1, 1], [], []>} : vector<8x16xf32>, vector<16x32xf32>, vector<8x32xf32> -> vector<8x32xf32>
    %c0_3 = arith.constant 0 : index
    %c0_4 = arith.constant 0 : index
    %3 = vector.load %arg3[%c0_3, %c0_4] : memref<1x32xf32, #tpu.memory_space<vmem>>, vector<1x32xf32>
    %4 = vector.broadcast %3 : vector<1x32xf32> to vector<8x32xf32>
    %5 = arith.addf %2, %4 : vector<8x32xf32>
    %6 = arith.negf %5 : vector<8x32xf32>
    %7 = math.exp %6 : vector<8x32xf32>
    %cst_5 = arith.constant 1.000000e+00 : f32
    %8 = vector.broadcast %cst_5 : f32 to vector<8x32xf32>
    %9 = arith.addf %8, %7 : vector<8x32xf32>
    %10 = arith.divf %8, %9 : vector<8x32xf32>
    %c0_6 = arith.constant 0 : index
    %c0_7 = arith.constant 0 : index
    %11 = vector.load %arg4[%c0_6, %c0_7] : memref<32x128xf32, #tpu.memory_space<vmem>>, vector<32x128xf32>
    %cst_8 = arith.constant dense<0.000000e+00> : vector<8x128xf32>
    %12 = tpu.matmul %10, %11, %cst_8 {dimension_numbers = #tpu.dot_dimension_numbers<[1], [0], [0], [1], [0, 0, 1, 1], [], []>} : vector<8x32xf32>, vector<32x128xf32>, vector<8x128xf32> -> vector<8x128xf32>
    %c0_9 = arith.constant 0 : index
    %c0_10 = arith.constant 0 : index
    %13 = vector.load %arg5[%c0_9, %c0_10] : memref<1x128xf32, #tpu.memory_space<vmem>>, vector<1x128xf32>
    %14 = vector.broadcast %13 : vector<1x128xf32> to vector<8x128xf32>
    %15 = arith.addf %12, %14 : vector<8x128xf32>
    %c0_11 = arith.constant 0 : index
    %c0_12 = arith.constant 0 : index
    %16 = vector.load %arg6[%c0_11, %c0_12] : memref<8x128xf32, #tpu.memory_space<vmem>>, vector<8x128xf32>
    tpu.vector_store %arg6[%c0_11, %c0_12], %15 {strides = array<i32>} : memref<8x128xf32, #tpu.memory_space<vmem>>, vector<8x128xf32>,
    return
  }
  func.func @transform_0(%arg0: i32) -> (i32, i32) {
    %c0_i32 = arith.constant 0 : i32
    %c0_i32_0 = arith.constant 0 : i32
    return %arg0, %c0_i32 : i32, i32
  }
  func.func @transform_1(%arg0: i32) -> (i32, i32) {
    %c0_i32 = arith.constant 0 : i32
    %c0_i32_0 = arith.constant 0 : i32
    %c0_i32_1 = arith.constant 0 : i32
    return %c0_i32, %c0_i32_0 : i32, i32
  }
  func.func @transform_2(%arg0: i32) -> (i32, i32) {
    %c0_i32 = arith.constant 0 : i32
    %c0_i32_0 = arith.constant 0 : i32
    %c0_i32_1 = arith.constant 0 : i32
    return %c0_i32, %c0_i32_0 : i32, i32
  }
  func.func @transform_3(%arg0: i32) -> (i32, i32) {
    %c0_i32 = arith.constant 0 : i32
    %c0_i32_0 = arith.constant 0 : i32
    %c0_i32_1 = arith.constant 0 : i32
    return %c0_i32, %c0_i32_0 : i32, i32
  }
  func.func @transform_4(%arg0: i32) -> (i32, i32) {
    %c0_i32 = arith.constant 0 : i32
    %c0_i32_0 = arith.constant 0 : i32
    %c0_i32_1 = arith.constant 0 : i32
    return %c0_i32, %c0_i32_0 : i32, i32
  }
  func.func @transform_5(%arg0: i32) -> (i32, i32) {
    %c0_i32 = arith.constant 0 : i32
    %c0_i32_0 = arith.constant 0 : i32
    return %arg0, %c0_i32 : i32, i32
  }
}

</mosaic_0001>

<bundles_post_ra>
// kernel: tpu_custom_call.1
= control target key start
LH: loop header
LB: loop body
LE: loop exit
PB: predicated region body
PF: predicated region fallthrough
CT: control target
= control target key end

     0   :  { %10 = vsyncpa [#allocation3], 0  ;;  %s908_s0 = inlined_call_operand.hbm [shape: f32[16,16], index: 0, kind: input, shape index: {}]   ;;  %s909_s1 = inlined_call_operand.hbm [shape: f32[16,32], index: 1, kind: input, shape index: {}]   ;;  %s910_s2 = inlined_call_operand.vmem [shape: f32[1,32], index: 2, kind: input, shape index: {}]   ;;  %s911_s3 = inlined_call_operand.hbm [shape: f32[32,128], index: 3, kind: input, shape index: {}]   ;;  %s912_s4 = inlined_call_operand.vmem [shape: f32[1,128], index: 4, kind: input, shape index: {}]   ;;  %s913_s5 = inlined_call_operand.hbm [shape: f32[16,128], index: 5, kind: output, shape index: {}]  }
   0x1   :  { %12 = vsyncpa [#allocation3 + $0x1], 0 }
   0x2   :  { %13 = vsyncpa [#allocation6], 0 }
   0x3   :  { %14 = vsyncpa [#allocation4], 0 }
   0x4   :  { %16 = vsyncpa [#allocation4 + $0x1], 0  ;;  %s753_s18 = smov 0   ;;  %s755_s19 = smov 0  }
   0x5   :  { %s757_s20 = smov 0   ;;  %s759_s21 = smov 0  }
   0x6 LB: > { %s174_s24 = sshll.u32 %s909_s1, 4  ;;  %s777_s25 = sadd.s32 4294967295, %s717_s21   ;;  %s717_s21 = sphi %s759_s21, %s924_s21   ;;  %s713_s20 = sphi %s757_s20, %s923_s20   ;;  %s709_s19 = sphi %s755_s19, %s922_s19   ;;  %s705_s18 = sphi %s753_s18, %s921_s18   ;;  %s175_s24 = int_to_ptr.hbm [resolvable:$true] %s174_s24 }
   0x7   : > { %p464_p0 = scmp.ge.s32.totalorder %s717_s21, 1  ;;  %p43_p1 = scmp.eq.s32.totalorder %s777_s25, 0 }
   0x8   : > { %p163_p2 = scmp.lt.s32.totalorder %s717_s21, 3  ;;  %s719_s27 = smov [#allocation5]  }
   0x9   : > { %s176_s28 = sshll.u32 %s719_s27, 4  ;;  %s191_s6 = sshll.u32 %s911_s3, 4  ;;  %s177_s28 = int_to_ptr.vmem [resolvable:$true] %s176_s28  ;;  %s192_s6 = int_to_ptr.hbm [resolvable:$true] %s191_s6 }
   0xa   : > { %p782_p3 = pnand %p464_p0, %p163_p2  ;;  %s720_s7 = smov [#allocation7]  }
   0xb   : > { %s193_s8 = sshll.u32 %s720_s7, 4  ;;  %s721_s9 = smov 128   ;;  %s194_s8 = int_to_ptr.vmem [resolvable:$true] %s193_s8 }
   0xc   : > { %p494_p4 = pneg %p782_p3  ;;  %s722_s10 = smov 8  }
   0xd   : > { %s463_s11 = sadd.s32 4294967294, %s717_s21   ;;  %s796_s12 = sadd.s32 1, %s717_s21  }
   0xe   : > { %p495_p6 = pnand %p494_p4, %p43_p1  ;;  %s26_s13 = ssub.s32 %s717_s21, %s796_s12 }
   0xf   : > { %s29_s14 = sadd.s32 1, %s713_s20  ;;  %p27_p7 = scmp.eq.s32.totalorder %s26_s13, 0 }
  0x10   : > { %497 = dma.hbm_to_vmem [thread:$0]  (!%p495_p6), %s175_s24, 256, %s177_s28, [#allocation6], %s721_s9, %s721_s9, %s722_s10  }
  0x11   : > { %500 = dma.hbm_to_vmem [thread:$0]  (!%p495_p6), %s192_s6, 512, %s194_s8, [#allocation6], %s721_s9, %s721_s9, %s722_s10  }
  0x12   : > { %p36_p8 = scmp.ne.s32.totalorder %s713_s20, %s709_s19  ;;  %p37_p9 = scmp.eq.s32.totalorder %s717_s21, 0 }
  0x13   : > { %p42_p10 = scmp.ne.s32.totalorder %s709_s19, %s705_s18  ;;  %p150_p13 = scmp.eq.s32.totalorder %s777_s25, 1 }
  0x14   : > { %s807_s15 = scalar_select %p27_p7, %s713_s20, %s29_s14  }
  0x15   : > { %p809_p11 = por %p37_p9, %p36_p8  ;;  %p815_p12 = por %p43_p1, %p42_p10 }
  0x16   : > { %p156_p0 = scmp.eq.s32.totalorder %s463_s11, 1  ;;  %p511_p2 = scmp.lt.s32.totalorder %s717_s21, 2 }
  0x17   : > { %s210_s22 = sand.u32 1, %s713_s20   ;;  %p822_p4 = por %p150_p13, %p36_p8 }
  0x18   : > { %p826_p6 = por %p156_p0, %p42_p10  ;;  %s468_s27 = sshll.u32 %s210_s22, 3 }
  0x19   : > { %s469_s28 = sshll.u32 %s717_s21, 3  ;;  %s214_s7 = scalar_lea.vmem [#allocation2], %s468_s27 }
  0x1a   : > { %s218_s6 = scalar_lea.hbm %s908_s0, %s469_s28  ;;  %s222_s8 = sshll.u32 %s214_s7, 4  ;;  %s223_s8 = int_to_ptr.vmem [resolvable:$true] %s222_s8 }
  0x1b   : > { %s220_s9 = sshll.u32 %s218_s6, 4  ;;  %p836_p7 = pnand %p511_p2, %p809_p11  ;;  %s221_s9 = int_to_ptr.hbm [resolvable:$true] %s220_s9 }
  0x1c   : > { %s211_s11 = scalar_lea.sflag [#allocation3], %s210_s22  ;;  %s617_s13 = sshra.s32 %s221_s9, 4  ;;  %s618_s13 = int_to_ptr.hbm [resolvable:$true] %s617_s13 }
  0x1d   : > { %s619_s14 = scalar_lea.hbm %s618_s13, 8  ;;  %p621_p9 = pneg %p836_p7 }
  0x1e   : > { %p620_p8 = scmp.ne.s32.totalorder %s618_s13, %s619_s14  ;;  %s624_s29 = scalar_lea.hbm %s908_s0, 16 }
  0x1f   : > { %p625_p11 = scmp.lt.s32.totalorder %s618_s13, %s908_s0  ;;  %p626_p0 = scmp.lt.s32.totalorder %s624_s29, %s619_s14 }
  0x20   : > { %p622_p10 = pnand %p621_p9, %p620_p8 }
  0x21   : > { %p627_p2 = por %p626_p0, %p625_p11 }
  0x22   : > { %p623_p13 = pneg %p622_p10 }
  0x24   : > { %p628_p5 = pnand %p627_p2, %p623_p13 }
  0x26   : > { %631 = shalt.err (!%p628_p5)
}
  0x27   : > { %504 = dma.hbm_to_vmem [thread:$0]  (!%p836_p7), %s221_s9, 128, %s223_s8, %s211_s11  }
  0x28   : > { %231 = sbr.rel (%p782_p3) target bundleno = 339 (0x153), region = 40  ;;  %s853_s22 = sand.u32 (!%p782_p3), 1, %s709_s19  }
  0x29   : > { %s471_s6 = sshll.u32 (!%p782_p3), %s853_s22, 3  ;;  %s234_s7 = scalar_lea.sflag (!%p782_p3), [#allocation3], %s853_s22 }
  0x2a   : > { %s237_s13 = scalar_lea.vmem (!%p782_p3), [#allocation2], %s471_s6 }
  0x2d   : > { %692 = dma.done.wait (%p815_p12), %s234_s7, 128  }
  0x2e   : > { %694 = vsyncadd (%p815_p12), %s234_s7, 4294967168 }
  0x2f   : > { %696 = dma.done.wait (%p43_p1), [#allocation6], 768  }
  0x30   : > { %698 = vsyncadd (%p43_p1), [#allocation6], 4294966528  ;;  %v277_v0 = vld [vmem:[#allocation5 + $0x8] sm:$0xff]  ;;  %v276_v1 = vld [vmem:[#allocation5] sm:$0xff]  ;;  %vm282_vm0 = vcmask 130048   ;;  %vm333_vm4 = vcmask 261120  }
  0x31   : > { %300 = vmatpush.msra.mxu0 %v277_v0  ;;  %v275_v2 = vld [vmem:[%s237_s13] sm:$0xff]  ;;  %v328_v3 = vld [vmem:[#allocation7 + $0x18] sm:$0xff]  ;;  %v327_v4 = vld [vmem:[#allocation7 + $0x10] sm:$0xff]  ;;  %s479_s8 = sshll.u32 %s777_s25, 3  ;;  %s274_s28 = scalar_lea.vmem [#allocation8], %s471_s6 }
  0x32   : > { %349 = vmatpush.msra.mxu1 %v328_v3  ;;  %v326_v5 = vld [vmem:[#allocation7 + $0x8] sm:$0xff]  ;;  %v325_v6 = vld [vmem:[#allocation7] sm:$0xff]  ;;  %s369_s11 = scalar_lea.hbm %s913_s5, %s479_s8  ;;  %s371_s29 = sshll.u32 %s274_s28, 4  ;;  %s372_s29 = int_to_ptr.vmem [resolvable:$true] %s371_s29 }
  0x33   : > { %301 = vmatpush.msra.mxu0 %v276_v1  ;;  %v551_v7 = vld [vmem:[%s910_s2] ss:$0 sm:$0xff]  ;;  %s373_s30 = sshll.u32 %s369_s11, 4  ;;  %s359_s16 = scalar_lea.sflag [#allocation4], %s853_s22  ;;  %s374_s30 = int_to_ptr.hbm [resolvable:$true] %s373_s30 }
  0x34   : > { %475 = vmatmul.msk.f32.vlgmr.msra.gmra.mxu0 %vm282_vm0, %v275_v2  ;;  %350 = vmatpush.msra.mxu1 %v327_v4  ;;  %v552_v23 = vld [vmem:[%s912_s4] ss:$0 sm:$0xff]  ;;  %s661_s25 = sshra.s32 %s374_s30, 4  ;;  %s667_s17 = scalar_lea.hbm %s913_s5, 16  ;;  %s662_s25 = int_to_ptr.hbm [resolvable:$true] %s661_s25 }
  0x35   : > { %s663_s7 = scalar_lea.hbm %s662_s25, 8  ;;  %p668_p12 = scmp.lt.s32.totalorder %s662_s25, %s913_s5 }
  0x36   : > { %351 = vmatpush.msra.mxu1 %v326_v5  ;;  %p664_p1 = scmp.ne.s32.totalorder %s662_s25, %s663_s7  ;;  %p669_p7 = scmp.lt.s32.totalorder %s667_s17, %s663_s7 }
  0x38   : > { %352 = vmatpush.msra.mxu1 %v325_v6  ;;  %p665_p3 = pnand %p664_p1, %p822_p4  ;;  %p670_p8 = por %p669_p7, %p668_p12 }
  0x3a   : > { %p666_p5 = pneg %p665_p3 }
  0x3c   : > { %p671_p9 = pnand %p670_p8, %p666_p5 }
  0xb1   : > { %v303_v8 = vpop.f32.mrf.mxu0 }
  0xb2   : > { %v304_v9 = vadd.f32 %v551_v7, %v303_v8 }
  0xb4   : > { %v476_v10 = vmul.f32 -1.442695, %v304_v9 }
  0xb6   : > { %553 = vpow2.f32 %v476_v10 }
  0xbc   : > { %v554_v11 = vpop.eup %553 }
  0xbd   : > { %v309_v12 = vadd.f32 1.0, %v554_v11 }
  0xbf   : > { %555 = vrcp.f32 %v309_v12  ;;  %v321_v16 = vand.u32 2147483648, %v309_v12  ;;  %v319_v18 = vand.u32 2147483647, %v309_v12  ;;  %vm315_vm2 = vweird.f32 %v309_v12 }
  0xc1   : > { %v322_v20 = vor.u32 1.1754944e-38, %v321_v16  ;;  %vm320_vm5 = vcmp.eq.f32.partialorder %v319_v18, 8.507059e+37 }
  0xc5   : > { %v556_v13 = vpop.eup %555 }
  0xc6   : > { %v311_v14 = vmul.f32 %v556_v13, %v309_v12  ;;  %vm316_vm1 = vweird.f32 %v556_v13 }
  0xc7   : > { %vm317_vm3 = vmor %vm315_vm2, %vm316_vm1 }
  0xc8   : > { %v312_v15 = vsub.f32 1.0, %v311_v14 }
  0xca   : > { %v313_v17 = vmul.f32 %v556_v13, %v312_v15 }
  0xcc   : > { %v314_v19 = vadd.f32 %v556_v13, %v313_v17 }
  0xce   : > { %v318_v21 = vsel %vm317_vm3, %v556_v13, %v314_v19 }
  0xcf   : > { %v323_v22 = vsel %vm320_vm5, %v322_v20, %v318_v21 }
  0xd0   : > { %477 = vmatmul.msk.f32.vlgmr.msra.gmra.mxu1 %vm333_vm4, %v323_v22 }
 0x14d   : > { %v354_v24 = vpop.f32.mrf.mxu1 }
 0x14e   : > { %v355_v25 = vadd.f32 %v552_v23, %v354_v24 }
 0x150   : > { %357 = vst [vmem:[%s274_s28] sm:$0xff] %v355_v25 }
 0x151   : > { %674 = shalt.err (!%p671_p9)
}
 0x152   : > { %492 = dma.vmem_to_hbm [thread:$0]  (%p822_p4), %s372_s29, 128, %s374_s30, %s359_s16  }
 0x153 PF: > { %s385_s22 = sand.u32 1, %s705_s18   ;;  %p920_p10 = scmp.ge.s32.totalorder %s717_s21, 2 }
 0x154   : > { %s386_s9 = scalar_lea.sflag [#allocation4], %s385_s22 }
 0x155   : > { %p506_p13 = pnand %p920_p10, %p826_p6 }
 0x157   : > { %p507_p11 = pneg %p506_p13 }
 0x159   : > { %700 = dma.done.wait (%p507_p11), %s386_s9, 128  }
 0x15a   : > { %702 = vsyncadd (%p507_p11), %s386_s9, 4294967168  ;;  %p19_p0 = scmp.ge.s32.totalorder %s796_s12, 4   ;;  %s921_s18 = smov %s709_s19 }
 0x15b   : > { %s922_s19 = smov %s713_s20  ;;  %s923_s20 = smov %s807_s15 }
 0x15c   : > { %s924_s21 = smov %s796_s12  ;;  %21 = sbr.rel (!%p19_p0) target bundleno = 6 (0x6), region = 93 }
 0x161   :  { %392 = vsyncpa [#allocation3], 1 }
 0x162   :  { %394 = vsyncpa [#allocation3 + $0x1], 1 }
 0x163   :  { %395 = vsyncpa [#allocation6], 1 }
 0x164   :  { %396 = vsyncpa [#allocation4], 1 }
 0x165   :  { %398 = vsyncpa [#allocation4 + $0x1], 1 }

</bundles_post_ra>
